<compile_context>
chip_gen: v5e
topology: v5e:2x2
jax: 0.10.0
libtpu: 0.0.40
codegen_flags: <defaults>
</compile_context>

<pallas_src>
import jax
import jax.numpy as jnp
import numpy as np
from jax.experimental import pallas as pl
from jax.experimental.pallas import tpu as pltpu


def _conv1d_k3_relu(h_bf16, w_ref, b_ref):
    """Conv1d(kernel_size=3, stride=1, padding=1) + ReLU, channels-last.

    h_bf16: (B, T, Cin) bf16
    w_ref : (Cin, 3*Cout) bf16 -- taps concatenated along columns; tap k reads x[t+k-1]
    b_ref : (1, Cout) f32
    returns (B, T, Cout) f32
    """
    B, T, cin = h_bf16.shape
    cout = b_ref.shape[-1]
    y = jnp.dot(h_bf16.reshape(B * T, cin), w_ref[...],
                preferred_element_type=jnp.float32).reshape(B, T, 3 * cout)
    y0 = y[:, :, :cout]            # tap 0: contributes y0[t-1] to out[t]
    y1 = y[:, :, cout:2 * cout]    # tap 1: contributes y1[t]
    y2 = y[:, :, 2 * cout:]        # tap 2: contributes y2[t+1]
    t_idx = jax.lax.broadcasted_iota(jnp.int32, (B, T, cout), 1)
    # out[t] = y0[t-1] + y1[t] + y2[t+1]  (zero padding at the sequence edges);
    # shifts go through the XLU (roll) with a cheap VPU mask for the edges.
    y0s = jnp.where(t_idx == 0, 0.0, pltpu.roll(y0, 1, axis=1))
    y2s = jnp.where(t_idx == T - 1, 0.0, pltpu.roll(y2, T - 1, axis=1))
    out = y0s + y1 + y2s + b_ref[...][None, :, :]
    return jnp.maximum(out, 0.0)


def _history_encoder_kernel(
    x_ref, w1_ref, b1_ref, w2_ref, b2_ref, w3_ref, b3_ref, wfc_ref, bfc_ref, out_ref
):
    x = x_ref[...]                                                 # (TB, T, CinP) bf16
    h = _conv1d_k3_relu(x, w1_ref, b1_ref)                         # (TB, T, 128) f32
    h = _conv1d_k3_relu(h.astype(jnp.bfloat16), w2_ref, b2_ref)    # (TB, T, 64)  f32
    h = _conv1d_k3_relu(h.astype(jnp.bfloat16), w3_ref, b3_ref)    # (TB, T, 32)  f32
    hb = h.astype(jnp.bfloat16)
    T = hb.shape[1]
    # fc over torch's channel-major flatten: out = sum_t h[:, t, :] @ Wfc[t] + bfc.
    parts = [
        jnp.dot(hb[:, t, :], wfc_ref[t], preferred_element_type=jnp.float32)
        for t in range(T)
    ]
    while len(parts) > 1:  # balanced tree-sum (no serial dependency chain)
        nxt = [parts[i] + parts[i + 1] for i in range(0, len(parts) - 1, 2)]
        if len(parts) % 2:
            nxt.append(parts[-1])
        parts = nxt
    out_ref[...] = parts[0] + bfc_ref[...]                         # (TB, 128) lane-dense


def _fuse_taps(w):
    """torch Conv1d weight (Cout, Cin, 3) -> (Cin, 3*Cout); tap k in cols [k*Cout,(k+1)*Cout)."""
    cout, cin, k = w.shape
    return jnp.transpose(w, (1, 2, 0)).reshape(cin, k * cout)


def history_encoder_forward(x, params, *, output_dim=32, final_dim=3, tile_b=256):
    """x: (B, T, input_dim) float32; params: torch-shaped weights/biases."""
    w1, b1, w2, b2, w3, b3, wfc, bfc = params
    B, T, cin = x.shape
    cin_p = ((cin + 127) // 128) * 128   # 330 -> 384: clean 3x128 K dimension
    out_p = 128                          # lane-dense padded output width

    # Conv weights: fused taps, bf16, Cin zero-padded for layer 1.
    w1f = jnp.pad(_fuse_taps(w1), ((0, cin_p - cin), (0, 0))).astype(jnp.bfloat16)
    w2f = _fuse_taps(w2).astype(jnp.bfloat16)                      # (128, 192)
    w3f = _fuse_taps(w3).astype(jnp.bfloat16)                      # (64, 96)

    # torch fc.weight is (final_dim, output_dim*T) with input index c*T + t (Flatten of
    # (B, output_dim, T)); rearrange to (T, output_dim, out_p) with zero-padded lanes.
    wfck = jnp.transpose(wfc.reshape(final_dim, output_dim, T), (2, 1, 0))
    wfcp = jnp.pad(wfck, ((0, 0), (0, 0), (0, out_p - final_dim))).astype(jnp.bfloat16)
    bfcp = jnp.pad(bfc.reshape(1, -1), ((0, 0), (0, out_p - final_dim))).astype(jnp.float32)

    # Batch tiling (pad B to a multiple of the tile; tiny B runs as a single full tile).
    tb = B if B <= tile_b else tile_b
    b_pad = ((B + tb - 1) // tb) * tb
    nb = b_pad // tb

    xp = jnp.pad(x, ((0, b_pad - B), (0, 0), (0, cin_p - cin))).astype(jnp.bfloat16)

    grid_spec = pltpu.PrefetchScalarGridSpec(
        num_scalar_prefetch=0,
        grid=(nb,),
        in_specs=[
            pl.BlockSpec((tb, T, cin_p), lambda i: (i, 0, 0)),       # x: tiled on batch
            # weights/biases: constant block index -> stay resident in VMEM across steps
            pl.BlockSpec((cin_p, 3 * 128), lambda i: (0, 0)),
            pl.BlockSpec((1, 128), lambda i: (0, 0)),
            pl.BlockSpec((128, 3 * 64), lambda i: (0, 0)),
            pl.BlockSpec((1, 64), lambda i: (0, 0)),
            pl.BlockSpec((64, 3 * output_dim), lambda i: (0, 0)),
            pl.BlockSpec((1, output_dim), lambda i: (0, 0)),
            pl.BlockSpec((T, output_dim, out_p), lambda i: (0, 0, 0)),
            pl.BlockSpec((1, out_p), lambda i: (0, 0)),
        ],
        out_specs=pl.BlockSpec((tb, out_p), lambda i: (i, 0)),
    )

    out_padded = pl.pallas_call(
        _history_encoder_kernel,
        out_shape=jax.ShapeDtypeStruct((b_pad, out_p), jnp.float32),
        grid_spec=grid_spec,
        compiler_params=pltpu.CompilerParams(
            dimension_semantics=("parallel",),          # v7x: both TCs split the batch
            vmem_limit_bytes=32 * 1024 * 1024,
        ),
    )(
        xp,
        w1f, b1.reshape(1, -1).astype(jnp.float32),
        w2f, b2.reshape(1, -1).astype(jnp.float32),
        w3f, b3.reshape(1, -1).astype(jnp.float32),
        wfcp, bfcp,
    )
    return out_padded[:B, :final_dim]


def _reference_forward(x, params):
    """Pure-JAX mirror of the PyTorch forward (NCW conv layout) for correctness check."""
    w1, b1, w2, b2, w3, b3, wfc, bfc = params
    h = jnp.transpose(x, (0, 2, 1))  # (B, Cin, T) == torch x.permute(0, 2, 1)

    def conv(h, w, b):
        out = jax.lax.conv_general_dilated(
            h, w, window_strides=(1,), padding=((1, 1),),
            dimension_numbers=("NCH", "OIH", "NCH"))
        return jax.nn.relu(out + b[None, :, None])

    h = conv(h, w1, b1)
    h = conv(h, w2, b2)
    h = conv(h, w3, b3)
    flat = h.reshape(h.shape[0], -1)  # channel-major flatten, like torch nn.Flatten
    return flat @ wfc.T + bfc[None, :]


def _init_params(key, history_length, input_dim, output_dim, final_dim):
    ks = jax.random.split(key, 8)
    scale = 0.05
    w1 = scale * jax.random.normal(ks[0], (128, input_dim, 3), jnp.float32)
    b1 = scale * jax.random.normal(ks[1], (128,), jnp.float32)
    w2 = scale * jax.random.normal(ks[2], (64, 128, 3), jnp.float32)
    b2 = scale * jax.random.normal(ks[3], (64,), jnp.float32)
    w3 = scale * jax.random.normal(ks[4], (output_dim, 64, 3), jnp.float32)
    b3 = scale * jax.random.normal(ks[5], (output_dim,), jnp.float32)
    wfc = scale * jax.random.normal(ks[6], (final_dim, output_dim * history_length), jnp.float32)
    bfc = scale * jax.random.normal(ks[7], (final_dim,), jnp.float32)
    return (w1, b1, w2, b2, w3, b3, wfc, bfc)


if __name__ == "__main__":
    B = 2
    history_length = 8
    input_dim = 330
    output_dim = 32
    final_dim = 3

    key = jax.random.PRNGKey(0)
    kx, kp = jax.random.split(key)
    x = jax.random.normal(kx, (B, history_length, input_dim), jnp.float32)
    params = _init_params(kp, history_length, input_dim, output_dim, final_dim)

    out = history_encoder_forward(x, params, output_dim=output_dim, final_dim=final_dim)
    out = jax.block_until_ready(out)

    ref = jax.block_until_ready(_reference_forward(x, params))
    # bf16 MXU inputs (f32 accumulation) -> relaxed tolerance vs the f32 reference.
    np.testing.assert_allclose(np.asarray(out), np.asarray(ref), rtol=5e-2, atol=5e-2)

    print("KERNEL_OK")
</pallas_src>

<mosaic_0001>
module attributes {stable_mosaic.version = 11 : i64} {
  func.func @_history_encoder_kernel(%arg0: i32, %arg1: memref<2x8x384xbf16, #tpu.memory_space<vmem>>, %arg2: memref<384x384xbf16, #tpu.memory_space<vmem>>, %arg3: memref<1x128xf32, #tpu.memory_space<vmem>>, %arg4: memref<128x192xbf16, #tpu.memory_space<vmem>>, %arg5: memref<1x64xf32, #tpu.memory_space<vmem>>, %arg6: memref<64x96xbf16, #tpu.memory_space<vmem>>, %arg7: memref<1x32xf32, #tpu.memory_space<vmem>>, %arg8: memref<8x32x128xbf16, #tpu.memory_space<vmem>>, %arg9: memref<1x128xf32, #tpu.memory_space<vmem>>, %arg10: memref<2x128xf32, #tpu.memory_space<vmem>>) attributes {dimension_semantics = [#tpu.dimension_semantics<parallel>], iteration_bounds = array<i64: 1>, scalar_prefetch = 0 : i64, scratch_operands = 0 : i64, tpu.core_type = #tpu.core_type<tc>, window_params = [{transform_indices = @transform_0, window_bounds = array<i64: 2, 8, 384>}, {pipeline_mode = #tpu.pipeline_mode<synchronous>, transform_indices = @transform_1, window_bounds = array<i64: 384, 384>}, {pipeline_mode = #tpu.pipeline_mode<synchronous>, transform_indices = @transform_2, window_bounds = array<i64: 1, 128>}, {pipeline_mode = #tpu.pipeline_mode<synchronous>, transform_indices = @transform_3, window_bounds = array<i64: 128, 192>}, {pipeline_mode = #tpu.pipeline_mode<synchronous>, transform_indices = @transform_4, window_bounds = array<i64: 1, 64>}, {pipeline_mode = #tpu.pipeline_mode<synchronous>, transform_indices = @transform_5, window_bounds = array<i64: 64, 96>}, {pipeline_mode = #tpu.pipeline_mode<synchronous>, transform_indices = @transform_6, window_bounds = array<i64: 1, 32>}, {pipeline_mode = #tpu.pipeline_mode<synchronous>, transform_indices = @transform_7, window_bounds = array<i64: 8, 32, 128>}, {pipeline_mode = #tpu.pipeline_mode<synchronous>, transform_indices = @transform_8, window_bounds = array<i64: 1, 128>}, {transform_indices = @transform_9, window_bounds = array<i64: 2, 128>}]} {
    %c0 = arith.constant 0 : index
    %c0_0 = arith.constant 0 : index
    %c0_1 = arith.constant 0 : index
    %0 = vector.load %arg1[%c0, %c0_0, %c0_1] : memref<2x8x384xbf16, #tpu.memory_space<vmem>>, vector<2x8x384xbf16>
    %1 = vector.shape_cast %0 : vector<2x8x384xbf16> to vector<16x384xbf16>
    %c0_2 = arith.constant 0 : index
    %c0_3 = arith.constant 0 : index
    %2 = vector.load %arg2[%c0_2, %c0_3] : memref<384x384xbf16, #tpu.memory_space<vmem>>, vector<384x384xbf16>
    %cst = arith.constant dense<0.000000e+00> : vector<16x384xf32>
    %3 = tpu.matmul %1, %2, %cst {dimension_numbers = #tpu.dot_dimension_numbers<[1], [0], [0], [1], [0, 0, 1, 1], [], []>} : vector<16x384xbf16>, vector<384x384xbf16>, vector<16x384xf32> -> vector<16x384xf32>
    %4 = vector.shape_cast %3 : vector<16x384xf32> to vector<2x8x384xf32>
    %5 = vector.extract_strided_slice %4 {offsets = [0, 0, 0], sizes = [2, 8, 128], strides = [1, 1, 1]} : vector<2x8x384xf32> to vector<2x8x128xf32>
    %6 = vector.extract_strided_slice %4 {offsets = [0, 0, 128], sizes = [2, 8, 128], strides = [1, 1, 1]} : vector<2x8x384xf32> to vector<2x8x128xf32>
    %7 = vector.extract_strided_slice %4 {offsets = [0, 0, 256], sizes = [2, 8, 128], strides = [1, 1, 1]} : vector<2x8x384xf32> to vector<2x8x128xf32>
    %8 = tpu.iota {dimensions = array<i32: 1>} : vector<2x8x128xi32>
    %c0_i32 = arith.constant 0 : i32
    %9 = vector.broadcast %c0_i32 : i32 to vector<2x8x128xi32>
    %10 = arith.cmpi eq, %8, %9 : vector<2x8x128xi32>
    %c1_i32 = arith.constant 1 : i32
    %11 = tpu.dynamic_rotate %5 by %c1_i32 dim 1 : vector<2x8x128xf32>, i32 -> vector<2x8x128xf32>
    %cst_4 = arith.constant 0.000000e+00 : f32
    %12 = vector.broadcast %cst_4 : f32 to vector<2x8x128xf32>
    %13 = arith.select %10, %12, %11 : vector<2x8x128xi1>, vector<2x8x128xf32>
    %c7_i32 = arith.constant 7 : i32
    %14 = vector.broadcast %c7_i32 : i32 to vector<2x8x128xi32>
    %15 = arith.cmpi eq, %8, %14 : vector<2x8x128xi32>
    %c7_i32_5 = arith.constant 7 : i32
    %16 = tpu.dynamic_rotate %7 by %c7_i32_5 dim 1 : vector<2x8x128xf32>, i32 -> vector<2x8x128xf32>
    %cst_6 = arith.constant 0.000000e+00 : f32
    %17 = vector.broadcast %cst_6 : f32 to vector<2x8x128xf32>
    %18 = arith.select %15, %17, %16 : vector<2x8x128xi1>, vector<2x8x128xf32>
    %19 = arith.addf %13, %6 : vector<2x8x128xf32>
    %20 = arith.addf %19, %18 : vector<2x8x128xf32>
    %c0_7 = arith.constant 0 : index
    %c0_8 = arith.constant 0 : index
    %21 = vector.load %arg3[%c0_7, %c0_8] : memref<1x128xf32, #tpu.memory_space<vmem>>, vector<1x128xf32>
    %22 = vector.shape_cast %21 : vector<1x128xf32> to vector<1x1x128xf32>
    %23 = vector.broadcast %22 : vector<1x1x128xf32> to vector<2x8x128xf32>
    %24 = arith.addf %20, %23 : vector<2x8x128xf32>
    %cst_9 = arith.constant 0.000000e+00 : f32
    %25 = vector.broadcast %cst_9 : f32 to vector<2x8x128xf32>
    %26 = arith.maximumf %24, %25 : vector<2x8x128xf32>
    %27 = arith.truncf %26 : vector<2x8x128xf32> to vector<2x8x128xbf16>
    %28 = vector.shape_cast %27 : vector<2x8x128xbf16> to vector<16x128xbf16>
    %c0_10 = arith.constant 0 : index
    %c0_11 = arith.constant 0 : index
    %29 = vector.load %arg4[%c0_10, %c0_11] : memref<128x192xbf16, #tpu.memory_space<vmem>>, vector<128x192xbf16>
    %cst_12 = arith.constant dense<0.000000e+00> : vector<16x192xf32>
    %30 = tpu.matmul %28, %29, %cst_12 {dimension_numbers = #tpu.dot_dimension_numbers<[1], [0], [0], [1], [0, 0, 1, 1], [], []>} : vector<16x128xbf16>, vector<128x192xbf16>, vector<16x192xf32> -> vector<16x192xf32>
    %31 = vector.shape_cast %30 : vector<16x192xf32> to vector<2x8x192xf32>
    %32 = vector.extract_strided_slice %31 {offsets = [0, 0, 0], sizes = [2, 8, 64], strides = [1, 1, 1]} : vector<2x8x192xf32> to vector<2x8x64xf32>
    %33 = vector.extract_strided_slice %31 {offsets = [0, 0, 64], sizes = [2, 8, 64], strides = [1, 1, 1]} : vector<2x8x192xf32> to vector<2x8x64xf32>
    %34 = vector.extract_strided_slice %31 {offsets = [0, 0, 128], sizes = [2, 8, 64], strides = [1, 1, 1]} : vector<2x8x192xf32> to vector<2x8x64xf32>
    %35 = tpu.iota {dimensions = array<i32: 1>} : vector<2x8x64xi32>
    %c0_i32_13 = arith.constant 0 : i32
    %36 = vector.broadcast %c0_i32_13 : i32 to vector<2x8x64xi32>
    %37 = arith.cmpi eq, %35, %36 : vector<2x8x64xi32>
    %c1_i32_14 = arith.constant 1 : i32
    %38 = tpu.dynamic_rotate %32 by %c1_i32_14 dim 1 : vector<2x8x64xf32>, i32 -> vector<2x8x64xf32>
    %cst_15 = arith.constant 0.000000e+00 : f32
    %39 = vector.broadcast %cst_15 : f32 to vector<2x8x64xf32>
    %40 = arith.select %37, %39, %38 : vector<2x8x64xi1>, vector<2x8x64xf32>
    %c7_i32_16 = arith.constant 7 : i32
    %41 = vector.broadcast %c7_i32_16 : i32 to vector<2x8x64xi32>
    %42 = arith.cmpi eq, %35, %41 : vector<2x8x64xi32>
    %c7_i32_17 = arith.constant 7 : i32
    %43 = tpu.dynamic_rotate %34 by %c7_i32_17 dim 1 : vector<2x8x64xf32>, i32 -> vector<2x8x64xf32>
    %cst_18 = arith.constant 0.000000e+00 : f32
    %44 = vector.broadcast %cst_18 : f32 to vector<2x8x64xf32>
    %45 = arith.select %42, %44, %43 : vector<2x8x64xi1>, vector<2x8x64xf32>
    %46 = arith.addf %40, %33 : vector<2x8x64xf32>
    %47 = arith.addf %46, %45 : vector<2x8x64xf32>
    %c0_19 = arith.constant 0 : index
    %c0_20 = arith.constant 0 : index
    %48 = vector.load %arg5[%c0_19, %c0_20] : memref<1x64xf32, #tpu.memory_space<vmem>>, vector<1x64xf32>
    %49 = vector.shape_cast %48 : vector<1x64xf32> to vector<1x1x64xf32>
    %50 = vector.broadcast %49 : vector<1x1x64xf32> to vector<2x8x64xf32>
    %51 = arith.addf %47, %50 : vector<2x8x64xf32>
    %cst_21 = arith.constant 0.000000e+00 : f32
    %52 = vector.broadcast %cst_21 : f32 to vector<2x8x64xf32>
    %53 = arith.maximumf %51, %52 : vector<2x8x64xf32>
    %54 = arith.truncf %53 : vector<2x8x64xf32> to vector<2x8x64xbf16>
    %55 = vector.shape_cast %54 : vector<2x8x64xbf16> to vector<16x64xbf16>
    %c0_22 = arith.constant 0 : index
    %c0_23 = arith.constant 0 : index
    %56 = vector.load %arg6[%c0_22, %c0_23] : memref<64x96xbf16, #tpu.memory_space<vmem>>, vector<64x96xbf16>
    %cst_24 = arith.constant dense<0.000000e+00> : vector<16x96xf32>
    %57 = tpu.matmul %55, %56, %cst_24 {dimension_numbers = #tpu.dot_dimension_numbers<[1], [0], [0], [1], [0, 0, 1, 1], [], []>} : vector<16x64xbf16>, vector<64x96xbf16>, vector<16x96xf32> -> vector<16x96xf32>
    %58 = vector.shape_cast %57 : vector<16x96xf32> to vector<2x8x96xf32>
    %59 = vector.extract_strided_slice %58 {offsets = [0, 0, 0], sizes = [2, 8, 32], strides = [1, 1, 1]} : vector<2x8x96xf32> to vector<2x8x32xf32>
    %60 = vector.extract_strided_slice %58 {offsets = [0, 0, 32], sizes = [2, 8, 32], strides = [1, 1, 1]} : vector<2x8x96xf32> to vector<2x8x32xf32>
    %61 = vector.extract_strided_slice %58 {offsets = [0, 0, 64], sizes = [2, 8, 32], strides = [1, 1, 1]} : vector<2x8x96xf32> to vector<2x8x32xf32>
    %62 = tpu.iota {dimensions = array<i32: 1>} : vector<2x8x32xi32>
    %c0_i32_25 = arith.constant 0 : i32
    %63 = vector.broadcast %c0_i32_25 : i32 to vector<2x8x32xi32>
    %64 = arith.cmpi eq, %62, %63 : vector<2x8x32xi32>
    %c1_i32_26 = arith.constant 1 : i32
    %65 = tpu.dynamic_rotate %59 by %c1_i32_26 dim 1 : vector<2x8x32xf32>, i32 -> vector<2x8x32xf32>
    %cst_27 = arith.constant 0.000000e+00 : f32
    %66 = vector.broadcast %cst_27 : f32 to vector<2x8x32xf32>
    %67 = arith.select %64, %66, %65 : vector<2x8x32xi1>, vector<2x8x32xf32>
    %c7_i32_28 = arith.constant 7 : i32
    %68 = vector.broadcast %c7_i32_28 : i32 to vector<2x8x32xi32>
    %69 = arith.cmpi eq, %62, %68 : vector<2x8x32xi32>
    %c7_i32_29 = arith.constant 7 : i32
    %70 = tpu.dynamic_rotate %61 by %c7_i32_29 dim 1 : vector<2x8x32xf32>, i32 -> vector<2x8x32xf32>
    %cst_30 = arith.constant 0.000000e+00 : f32
    %71 = vector.broadcast %cst_30 : f32 to vector<2x8x32xf32>
    %72 = arith.select %69, %71, %70 : vector<2x8x32xi1>, vector<2x8x32xf32>
    %73 = arith.addf %67, %60 : vector<2x8x32xf32>
    %74 = arith.addf %73, %72 : vector<2x8x32xf32>
    %c0_31 = arith.constant 0 : index
    %c0_32 = arith.constant 0 : index
    %75 = vector.load %arg7[%c0_31, %c0_32] : memref<1x32xf32, #tpu.memory_space<vmem>>, vector<1x32xf32>
    %76 = vector.shape_cast %75 : vector<1x32xf32> to vector<1x1x32xf32>
    %77 = vector.broadcast %76 : vector<1x1x32xf32> to vector<2x8x32xf32>
    %78 = arith.addf %74, %77 : vector<2x8x32xf32>
    %cst_33 = arith.constant 0.000000e+00 : f32
    %79 = vector.broadcast %cst_33 : f32 to vector<2x8x32xf32>
    %80 = arith.maximumf %78, %79 : vector<2x8x32xf32>
    %81 = arith.truncf %80 : vector<2x8x32xf32> to vector<2x8x32xbf16>
    %82 = vector.extract_strided_slice %81 {offsets = [0, 0, 0], sizes = [2, 1, 32], strides = [1, 1, 1]} : vector<2x8x32xbf16> to vector<2x1x32xbf16>
    %83 = vector.shape_cast %82 : vector<2x1x32xbf16> to vector<2x32xbf16>
    %c0_34 = arith.constant 0 : index
    %c0_35 = arith.constant 0 : index
    %c0_36 = arith.constant 0 : index
    %84 = vector.load %arg8[%c0_34, %c0_35, %c0_36] : memref<8x32x128xbf16, #tpu.memory_space<vmem>>, vector<1x32x128xbf16>
    %85 = vector.shape_cast %84 : vector<1x32x128xbf16> to vector<32x128xbf16>
    %cst_37 = arith.constant dense<0.000000e+00> : vector<2x128xf32>
    %86 = tpu.matmul %83, %85, %cst_37 {dimension_numbers = #tpu.dot_dimension_numbers<[1], [0], [0], [1], [0, 0, 1, 1], [], []>} : vector<2x32xbf16>, vector<32x128xbf16>, vector<2x128xf32> -> vector<2x128xf32>
    %87 = vector.extract_strided_slice %81 {offsets = [0, 1, 0], sizes = [2, 1, 32], strides = [1, 1, 1]} : vector<2x8x32xbf16> to vector<2x1x32xbf16>
    %88 = vector.shape_cast %87 : vector<2x1x32xbf16> to vector<2x32xbf16>
    %c1 = arith.constant 1 : index
    %c0_38 = arith.constant 0 : index
    %c0_39 = arith.constant 0 : index
    %89 = vector.load %arg8[%c1, %c0_38, %c0_39] : memref<8x32x128xbf16, #tpu.memory_space<vmem>>, vector<1x32x128xbf16>
    %90 = vector.shape_cast %89 : vector<1x32x128xbf16> to vector<32x128xbf16>
    %cst_40 = arith.constant dense<0.000000e+00> : vector<2x128xf32>
    %91 = tpu.matmul %88, %90, %cst_40 {dimension_numbers = #tpu.dot_dimension_numbers<[1], [0], [0], [1], [0, 0, 1, 1], [], []>} : vector<2x32xbf16>, vector<32x128xbf16>, vector<2x128xf32> -> vector<2x128xf32>
    %92 = vector.extract_strided_slice %81 {offsets = [0, 2, 0], sizes = [2, 1, 32], strides = [1, 1, 1]} : vector<2x8x32xbf16> to vector<2x1x32xbf16>
    %93 = vector.shape_cast %92 : vector<2x1x32xbf16> to vector<2x32xbf16>
    %c2 = arith.constant 2 : index
    %c0_41 = arith.constant 0 : index
    %c0_42 = arith.constant 0 : index
    %94 = vector.load %arg8[%c2, %c0_41, %c0_42] : memref<8x32x128xbf16, #tpu.memory_space<vmem>>, vector<1x32x128xbf16>
    %95 = vector.shape_cast %94 : vector<1x32x128xbf16> to vector<32x128xbf16>
    %cst_43 = arith.constant dense<0.000000e+00> : vector<2x128xf32>
    %96 = tpu.matmul %93, %95, %cst_43 {dimension_numbers = #tpu.dot_dimension_numbers<[1], [0], [0], [1], [0, 0, 1, 1], [], []>} : vector<2x32xbf16>, vector<32x128xbf16>, vector<2x128xf32> -> vector<2x128xf32>
    %97 = vector.extract_strided_slice %81 {offsets = [0, 3, 0], sizes = [2, 1, 32], strides = [1, 1, 1]} : vector<2x8x32xbf16> to vector<2x1x32xbf16>
    %98 = vector.shape_cast %97 : vector<2x1x32xbf16> to vector<2x32xbf16>
    %c3 = arith.constant 3 : index
    %c0_44 = arith.constant 0 : index
    %c0_45 = arith.constant 0 : index
    %99 = vector.load %arg8[%c3, %c0_44, %c0_45] : memref<8x32x128xbf16, #tpu.memory_space<vmem>>, vector<1x32x128xbf16>
    %100 = vector.shape_cast %99 : vector<1x32x128xbf16> to vector<32x128xbf16>
    %cst_46 = arith.constant dense<0.000000e+00> : vector<2x128xf32>
    %101 = tpu.matmul %98, %100, %cst_46 {dimension_numbers = #tpu.dot_dimension_numbers<[1], [0], [0], [1], [0, 0, 1, 1], [], []>} : vector<2x32xbf16>, vector<32x128xbf16>, vector<2x128xf32> -> vector<2x128xf32>
    %102 = vector.extract_strided_slice %81 {offsets = [0, 4, 0], sizes = [2, 1, 32], strides = [1, 1, 1]} : vector<2x8x32xbf16> to vector<2x1x32xbf16>
    %103 = vector.shape_cast %102 : vector<2x1x32xbf16> to vector<2x32xbf16>
    %c4 = arith.constant 4 : index
    %c0_47 = arith.constant 0 : index
    %c0_48 = arith.constant 0 : index
    %104 = vector.load %arg8[%c4, %c0_47, %c0_48] : memref<8x32x128xbf16, #tpu.memory_space<vmem>>, vector<1x32x128xbf16>
    %105 = vector.shape_cast %104 : vector<1x32x128xbf16> to vector<32x128xbf16>
    %cst_49 = arith.constant dense<0.000000e+00> : vector<2x128xf32>
    %106 = tpu.matmul %103, %105, %cst_49 {dimension_numbers = #tpu.dot_dimension_numbers<[1], [0], [0], [1], [0, 0, 1, 1], [], []>} : vector<2x32xbf16>, vector<32x128xbf16>, vector<2x128xf32> -> vector<2x128xf32>
    %107 = vector.extract_strided_slice %81 {offsets = [0, 5, 0], sizes = [2, 1, 32], strides = [1, 1, 1]} : vector<2x8x32xbf16> to vector<2x1x32xbf16>
    %108 = vector.shape_cast %107 : vector<2x1x32xbf16> to vector<2x32xbf16>
    %c5 = arith.constant 5 : index
    %c0_50 = arith.constant 0 : index
    %c0_51 = arith.constant 0 : index
    %109 = vector.load %arg8[%c5, %c0_50, %c0_51] : memref<8x32x128xbf16, #tpu.memory_space<vmem>>, vector<1x32x128xbf16>
    %110 = vector.shape_cast %109 : vector<1x32x128xbf16> to vector<32x128xbf16>
    %cst_52 = arith.constant dense<0.000000e+00> : vector<2x128xf32>
    %111 = tpu.matmul %108, %110, %cst_52 {dimension_numbers = #tpu.dot_dimension_numbers<[1], [0], [0], [1], [0, 0, 1, 1], [], []>} : vector<2x32xbf16>, vector<32x128xbf16>, vector<2x128xf32> -> vector<2x128xf32>
    %112 = vector.extract_strided_slice %81 {offsets = [0, 6, 0], sizes = [2, 1, 32], strides = [1, 1, 1]} : vector<2x8x32xbf16> to vector<2x1x32xbf16>
    %113 = vector.shape_cast %112 : vector<2x1x32xbf16> to vector<2x32xbf16>
    %c6 = arith.constant 6 : index
    %c0_53 = arith.constant 0 : index
    %c0_54 = arith.constant 0 : index
    %114 = vector.load %arg8[%c6, %c0_53, %c0_54] : memref<8x32x128xbf16, #tpu.memory_space<vmem>>, vector<1x32x128xbf16>
    %115 = vector.shape_cast %114 : vector<1x32x128xbf16> to vector<32x128xbf16>
    %cst_55 = arith.constant dense<0.000000e+00> : vector<2x128xf32>
    %116 = tpu.matmul %113, %115, %cst_55 {dimension_numbers = #tpu.dot_dimension_numbers<[1], [0], [0], [1], [0, 0, 1, 1], [], []>} : vector<2x32xbf16>, vector<32x128xbf16>, vector<2x128xf32> -> vector<2x128xf32>
    %117 = vector.extract_strided_slice %81 {offsets = [0, 7, 0], sizes = [2, 1, 32], strides = [1, 1, 1]} : vector<2x8x32xbf16> to vector<2x1x32xbf16>
    %118 = vector.shape_cast %117 : vector<2x1x32xbf16> to vector<2x32xbf16>
    %c7 = arith.constant 7 : index
    %c0_56 = arith.constant 0 : index
    %c0_57 = arith.constant 0 : index
    %119 = vector.load %arg8[%c7, %c0_56, %c0_57] : memref<8x32x128xbf16, #tpu.memory_space<vmem>>, vector<1x32x128xbf16>
    %120 = vector.shape_cast %119 : vector<1x32x128xbf16> to vector<32x128xbf16>
    %cst_58 = arith.constant dense<0.000000e+00> : vector<2x128xf32>
    %121 = tpu.matmul %118, %120, %cst_58 {dimension_numbers = #tpu.dot_dimension_numbers<[1], [0], [0], [1], [0, 0, 1, 1], [], []>} : vector<2x32xbf16>, vector<32x128xbf16>, vector<2x128xf32> -> vector<2x128xf32>
    %122 = arith.addf %86, %91 : vector<2x128xf32>
    %123 = arith.addf %96, %101 : vector<2x128xf32>
    %124 = arith.addf %106, %111 : vector<2x128xf32>
    %125 = arith.addf %116, %121 : vector<2x128xf32>
    %126 = arith.addf %122, %123 : vector<2x128xf32>
    %127 = arith.addf %124, %125 : vector<2x128xf32>
    %128 = arith.addf %126, %127 : vector<2x128xf32>
    %c0_59 = arith.constant 0 : index
    %c0_60 = arith.constant 0 : index
    %129 = vector.load %arg9[%c0_59, %c0_60] : memref<1x128xf32, #tpu.memory_space<vmem>>, vector<1x128xf32>
    %130 = vector.broadcast %129 : vector<1x128xf32> to vector<2x128xf32>
    %131 = arith.addf %128, %130 : vector<2x128xf32>
    %c0_61 = arith.constant 0 : index
    %c0_62 = arith.constant 0 : index
    %132 = vector.load %arg10[%c0_61, %c0_62] : memref<2x128xf32, #tpu.memory_space<vmem>>, vector<2x128xf32>
    tpu.vector_store %arg10[%c0_61, %c0_62], %131 {strides = array<i32>} : memref<2x128xf32, #tpu.memory_space<vmem>>, vector<2x128xf32>,
    return
  }
  func.func @transform_0(%arg0: i32) -> (i32, i32, i32) {
    %c0_i32 = arith.constant 0 : i32
    %c0_i32_0 = arith.constant 0 : i32
    %c0_i32_1 = arith.constant 0 : i32
    return %arg0, %c0_i32, %c0_i32_0 : i32, i32, i32
  }
  func.func @transform_1(%arg0: i32) -> (i32, i32) {
    %c0_i32 = arith.constant 0 : i32
    %c0_i32_0 = arith.constant 0 : i32
    %c0_i32_1 = arith.constant 0 : i32
    return %c0_i32, %c0_i32_0 : i32, i32
  }
  func.func @transform_2(%arg0: i32) -> (i32, i32) {
    %c0_i32 = arith.constant 0 : i32
    %c0_i32_0 = arith.constant 0 : i32
    %c0_i32_1 = arith.constant 0 : i32
    return %c0_i32, %c0_i32_0 : i32, i32
  }
  func.func @transform_3(%arg0: i32) -> (i32, i32) {
    %c0_i32 = arith.constant 0 : i32
    %c0_i32_0 = arith.constant 0 : i32
    %c0_i32_1 = arith.constant 0 : i32
    return %c0_i32, %c0_i32_0 : i32, i32
  }
  func.func @transform_4(%arg0: i32) -> (i32, i32) {
    %c0_i32 = arith.constant 0 : i32
    %c0_i32_0 = arith.constant 0 : i32
    %c0_i32_1 = arith.constant 0 : i32
    return %c0_i32, %c0_i32_0 : i32, i32
  }
  func.func @transform_5(%arg0: i32) -> (i32, i32) {
    %c0_i32 = arith.constant 0 : i32
    %c0_i32_0 = arith.constant 0 : i32
    %c0_i32_1 = arith.constant 0 : i32
    return %c0_i32, %c0_i32_0 : i32, i32
  }
  func.func @transform_6(%arg0: i32) -> (i32, i32) {
    %c0_i32 = arith.constant 0 : i32
    %c0_i32_0 = arith.constant 0 : i32
    %c0_i32_1 = arith.constant 0 : i32
    return %c0_i32, %c0_i32_0 : i32, i32
  }
  func.func @transform_7(%arg0: i32) -> (i32, i32, i32) {
    %c0_i32 = arith.constant 0 : i32
    %c0_i32_0 = arith.constant 0 : i32
    %c0_i32_1 = arith.constant 0 : i32
    %c0_i32_2 = arith.constant 0 : i32
    return %c0_i32, %c0_i32_0, %c0_i32_1 : i32, i32, i32
  }
  func.func @transform_8(%arg0: i32) -> (i32, i32) {
    %c0_i32 = arith.constant 0 : i32
    %c0_i32_0 = arith.constant 0 : i32
    %c0_i32_1 = arith.constant 0 : i32
    return %c0_i32, %c0_i32_0 : i32, i32
  }
  func.func @transform_9(%arg0: i32) -> (i32, i32) {
    %c0_i32 = arith.constant 0 : i32
    %c0_i32_0 = arith.constant 0 : i32
    return %arg0, %c0_i32 : i32, i32
  }
}

</mosaic_0001>

<bundles_post_ra>
// kernel: tpu_custom_call.1
= control target key start
LH: loop header
LB: loop body
LE: loop exit
PB: predicated region body
PF: predicated region fallthrough
CT: control target
= control target key end

     0   :  { %14 = vsyncpa [#allocation3], 0  ;;  %s2249_s0 = inlined_call_operand.vmem [shape: bf16[2,8,384], index: 0, kind: input, shape index: {}]   ;;  %s2250_s1 = inlined_call_operand.hbm [shape: bf16[384,384], index: 1, kind: input, shape index: {}]   ;;  %s2251_s2 = inlined_call_operand.vmem [shape: f32[1,128], index: 2, kind: input, shape index: {}]   ;;  %s2252_s3 = inlined_call_operand.vmem [shape: bf16[128,192], index: 3, kind: input, shape index: {}]   ;;  %s2253_s4 = inlined_call_operand.vmem [shape: f32[1,64], index: 4, kind: input, shape index: {}]   ;;  %s2254_s5 = inlined_call_operand.vmem [shape: bf16[64,96], index: 5, kind: input, shape index: {}]   ;;  %s2255_s6 = inlined_call_operand.vmem [shape: f32[1,32], index: 6, kind: input, shape index: {}]   ;;  %s2256_s7 = inlined_call_operand.vmem [shape: bf16[8,32,128], index: 7, kind: input, shape index: {}]   ;;  %s2257_s8 = inlined_call_operand.vmem [shape: f32[1,128], index: 8, kind: input, shape index: {}]   ;;  %s2258_s9 = inlined_call_operand.hbm [shape: f32[2,128], index: 9, kind: output, shape index: {}]  }
   0x1   :  { %15 = vsyncpa [#allocation4], 0  ;;  %s22_s11 = sshll.u32 %s2250_s1, 4  ;;  %s1938_s12 = smov [#allocation2]   ;;  %s23_s11 = int_to_ptr.hbm [resolvable:$true] %s22_s11 }
   0x2   :  { %s24_s13 = sshll.u32 %s1938_s12, 4  ;;  %s1939_s14 = smov 192   ;;  %s25_s13 = int_to_ptr.vmem [resolvable:$true] %s24_s13 }
   0x3   :  { %s1940_s15 = smov 12  }
   0x4   :  { %30 = dma.hbm_to_vmem [thread:$0]  %s23_s11, 9216, %s25_s13, [#allocation3], %s1939_s14, %s1939_s14, %s1940_s15  }
   0x5   :  { %1934 = dma.done.wait [#allocation3], 9216  }
   0x6   :  { %1935 = vsyncadd [#allocation3], 4294958080  ;;  %v1380_v0 = vld [vmem:[#allocation2 + $0xa8] sm:$0xf]  ;;  %v1790_v1 = vld [vmem:[#allocation2 + $0xb0] sm:$0xf0] }
   0x7   :  { %v1476_v2 = vld [vmem:[#allocation2 + $0x168] sm:$0xf]  ;;  %v1381_v3 = vor.u32 %v1790_v1, %v1380_v0  ;;  %v1814_v4 = vld [vmem:[#allocation2 + $0x170] sm:$0xf0]  ;;  %v1368_v5 = vld [vmem:[#allocation2 + $0x90] sm:$0xf] }
   0x8   :  { %v1787_v6 = vld [vmem:[#allocation2 + $0x98] sm:$0xf0]  ;;  %v1477_v7 = vor.u32 %v1814_v4, %v1476_v2  ;;  %v1464_v8 = vld [vmem:[#allocation2 + $0x150] sm:$0xf]  ;;  %v1356_v11 = vld [vmem:[#allocation2 + $0x78] sm:$0xf] }
   0x9   :  { %v1811_v9 = vld [vmem:[#allocation2 + $0x158] sm:$0xf0]  ;;  %550 = vmatpush.bf16.msra.mxu0 %v1381_v3  ;;  %v1369_v10 = vor.u32 %v1787_v6, %v1368_v5  ;;  %v1784_v12 = vld [vmem:[#allocation2 + $0x80] sm:$0xf0]  ;;  %v1452_v14 = vld [vmem:[#allocation2 + $0x138] sm:$0xf] }
   0xa   :  { %564 = vmatpush.bf16.msra.mxu1 %v1477_v7  ;;  %v1465_v13 = vor.u32 %v1811_v9, %v1464_v8  ;;  %v1808_v15 = vld [vmem:[#allocation2 + $0x140] sm:$0xf0]  ;;  %v1572_v16 = vld [vmem:[#allocation2 + $0x228] sm:$0xf]  ;;  %v1838_v17 = vld [vmem:[#allocation2 + $0x230] sm:$0xf0]  ;;  %v1357_v22 = vor.u32 %v1784_v12, %v1356_v11 }
   0xb   :  { %v1789_v18 = vld [vmem:[#allocation2 + $0xac] sm:$0xf]  ;;  %v1382_v19 = vld [vmem:[#allocation2 + $0xb4] sm:$0xf0]  ;;  %v1573_v20 = vor.u32 %v1838_v17, %v1572_v16  ;;  %v1344_v23 = vld [vmem:[#allocation2 + $0x60] sm:$0xf]  ;;  %v1453_v26 = vor.u32 %v1808_v15, %v1452_v14 }
   0xc   :  { %v1385_v21 = vor.u32 %v1789_v18, %v1382_v19  ;;  %v1560_v24 = vld [vmem:[#allocation2 + $0x210] sm:$0xf]  ;;  %v1835_v25 = vld [vmem:[#allocation2 + $0x218] sm:$0xf0]  ;;  %v1781_v27 = vld [vmem:[#allocation2 + $0x68] sm:$0xf0] }
   0xd   :  { %551 = vmatpush.bf16.msra.mxu0 %v1369_v10  ;;  %578 = vmatpush.bf16.msra.mxu2 %v1573_v20  ;;  %v1561_v28 = vor.u32 %v1835_v25, %v1560_v24  ;;  %v1786_v29 = vld [vmem:[#allocation2 + $0x94] sm:$0xf]  ;;  %v1370_v30 = vld [vmem:[#allocation2 + $0x9c] sm:$0xf0]  ;;  %v1805_v32 = vld [vmem:[#allocation2 + $0x128] sm:$0xf0]  ;;  %v1345_v37 = vor.u32 %v1781_v27, %v1344_v23 }
   0xe   :  { %565 = vmatpush.bf16.msra.mxu1 %v1465_v13  ;;  %592 = vmatpush.bf16.msra.mxu3 %v1385_v21  ;;  %v1440_v31 = vld [vmem:[#allocation2 + $0x120] sm:$0xf]  ;;  %v1373_v33 = vor.u32 %v1786_v29, %v1370_v30  ;;  %v1548_v34 = vld [vmem:[#allocation2 + $0x1f8] sm:$0xf]  ;;  %v1832_v35 = vld [vmem:[#allocation2 + $0x200] sm:$0xf0] }
   0xf   :  { %v1783_v36 = vld [vmem:[#allocation2 + $0x7c] sm:$0xf]  ;;  %v1358_v38 = vld [vmem:[#allocation2 + $0x84] sm:$0xf0]  ;;  %v1441_v39 = vor.u32 %v1805_v32, %v1440_v31  ;;  %v1778_v41 = vld [vmem:[#allocation2 + $0x50] sm:$0xf0]  ;;  %v1549_v43 = vor.u32 %v1832_v35, %v1548_v34 }
  0x10   :  { %v1332_v40 = vld [vmem:[#allocation2 + $0x48] sm:$0xf]  ;;  %v1802_v44 = vld [vmem:[#allocation2 + $0x110] sm:$0xf0]  ;;  %v1361_v45 = vor.u32 %v1783_v36, %v1358_v38  ;;  %v1536_v46 = vld [vmem:[#allocation2 + $0x1e0] sm:$0xf] }
  0x11   :  { %552 = vmatpush.bf16.msra.mxu0 %v1357_v22  ;;  %579 = vmatpush.bf16.msra.mxu2 %v1561_v28  ;;  %v1428_v42 = vld [vmem:[#allocation2 + $0x108] sm:$0xf]  ;;  %v1829_v47 = vld [vmem:[#allocation2 + $0x1e8] sm:$0xf0]  ;;  %v1780_v48 = vld [vmem:[#allocation2 + $0x64] sm:$0xf]  ;;  %v1333_v50 = vor.u32 %v1778_v41, %v1332_v40 }
  0x12   :  { %566 = vmatpush.bf16.msra.mxu1 %v1453_v26  ;;  %593 = vmatpush.bf16.msra.mxu3 %v1373_v33  ;;  %v1346_v49 = vld [vmem:[#allocation2 + $0x6c] sm:$0xf0]  ;;  %v1429_v51 = vor.u32 %v1802_v44, %v1428_v42  ;;  %v1775_v53 = vld [vmem:[#allocation2 + $0x38] sm:$0xf0]  ;;  %v1537_v55 = vor.u32 %v1829_v47, %v1536_v46  ;;  %v1524_v58 = vld [vmem:[#allocation2 + $0x1c8] sm:$0xf] }
  0x13   :  { %v1320_v52 = vld [vmem:[#allocation2 + $0x30] sm:$0xf]  ;;  %v1799_v56 = vld [vmem:[#allocation2 + $0xf8] sm:$0xf0]  ;;  %v1349_v57 = vor.u32 %v1780_v48, %v1346_v49  ;;  %v1826_v59 = vld [vmem:[#allocation2 + $0x1d0] sm:$0xf0] }
  0x14   :  { %v1416_v54 = vld [vmem:[#allocation2 + $0xf0] sm:$0xf]  ;;  %v1777_v60 = vld [vmem:[#allocation2 + $0x4c] sm:$0xf]  ;;  %v1334_v61 = vld [vmem:[#allocation2 + $0x54] sm:$0xf0]  ;;  %v1321_v62 = vor.u32 %v1775_v53, %v1320_v52  ;;  %v1525_v3 = vor.u32 %v1826_v59, %v1524_v58 }
  0x15   :  { %553 = vmatpush.bf16.msra.mxu0 %v1345_v37  ;;  %580 = vmatpush.bf16.msra.mxu2 %v1549_v43  ;;  %v1417_v63 = vor.u32 %v1799_v56, %v1416_v54  ;;  %v1308_v0 = vld [vmem:[#allocation2 + $0x18] sm:$0xf]  ;;  %v1772_v1 = vld [vmem:[#allocation2 + $0x20] sm:$0xf0]  ;;  %v1337_v5 = vor.u32 %v1777_v60, %v1334_v61  ;;  %v1512_v6 = vld [vmem:[#allocation2 + $0x1b0] sm:$0xf] }
  0x16   :  { %567 = vmatpush.bf16.msra.mxu1 %v1441_v39  ;;  %594 = vmatpush.bf16.msra.mxu3 %v1361_v45  ;;  %v1404_v2 = vld [vmem:[#allocation2 + $0xd8] sm:$0xf]  ;;  %v1796_v4 = vld [vmem:[#allocation2 + $0xe0] sm:$0xf0]  ;;  %v1823_v7 = vld [vmem:[#allocation2 + $0x1b8] sm:$0xf0]  ;;  %v1309_v10 = vor.u32 %v1772_v1, %v1308_v0 }
  0x17   :  { %v1774_v8 = vld [vmem:[#allocation2 + $0x34] sm:$0xf]  ;;  %v1322_v9 = vld [vmem:[#allocation2 + $0x3c] sm:$0xf0]  ;;  %v1405_v12 = vor.u32 %v1796_v4, %v1404_v2  ;;  %v1769_v13 = vld [vmem:[#allocation2 + $0x8] sm:$0xf0]  ;;  %v1513_v16 = vor.u32 %v1823_v7, %v1512_v6 }
  0x18   :  { %v1296_v11 = vld [vmem:[#allocation2] sm:$0xf]  ;;  %v1813_v14 = vld [vmem:[#allocation2 + $0x16c] sm:$0xf]  ;;  %v1478_v15 = vld [vmem:[#allocation2 + $0x174] sm:$0xf0]  ;;  %v1325_v20 = vor.u32 %v1774_v8, %v1322_v9 }
  0x19   :  { %554 = vmatpush.bf16.msra.mxu0 %v1333_v50  ;;  %581 = vmatpush.bf16.msra.mxu2 %v1537_v55  ;;  %v1392_v17 = vld [vmem:[#allocation2 + $0xc0] sm:$0xf]  ;;  %v1793_v18 = vld [vmem:[#allocation2 + $0xc8] sm:$0xf0]  ;;  %v1574_v21 = vld [vmem:[#allocation2 + $0x234] sm:$0xf0]  ;;  %v1297_v24 = vor.u32 %v1769_v13, %v1296_v11  ;;  %v1481_v29 = vor.u32 %v1813_v14, %v1478_v15 }
  0x1a   :  { %568 = vmatpush.bf16.msra.mxu1 %v1429_v51  ;;  %595 = vmatpush.bf16.msra.mxu3 %v1349_v57  ;;  %v1837_v19 = vld [vmem:[#allocation2 + $0x22c] sm:$0xf]  ;;  %v1500_v22 = vld [vmem:[#allocation2 + $0x198] sm:$0xf]  ;;  %v1820_v23 = vld [vmem:[#allocation2 + $0x1a0] sm:$0xf0]  ;;  %v1393_v30 = vor.u32 %v1793_v18, %v1392_v17 }
  0x1b   :  { %v1810_v25 = vld [vmem:[#allocation2 + $0x154] sm:$0xf]  ;;  %v1466_v26 = vld [vmem:[#allocation2 + $0x15c] sm:$0xf0]  ;;  %v1771_v27 = vld [vmem:[#allocation2 + $0x1c] sm:$0xf]  ;;  %v1577_v34 = vor.u32 %v1837_v19, %v1574_v21  ;;  %v1501_v36 = vor.u32 %v1820_v23, %v1500_v22 }
  0x1c   :  { %v1310_v28 = vld [vmem:[#allocation2 + $0x24] sm:$0xf0]  ;;  %v1834_v31 = vld [vmem:[#allocation2 + $0x214] sm:$0xf]  ;;  %v1284_v32 = vld [vmem:[%s2249_s0] sm:$0xf]  ;;  %v1469_v48 = vor.u32 %v1810_v25, %v1466_v26 }
  0x1d   :  { %555 = vmatpush.bf16.msra.mxu0 %v1321_v62  ;;  %582 = vmatpush.bf16.msra.mxu2 %v1525_v3  ;;  %v1766_v33 = vld [vmem:[%s2249_s0 + $0x8] sm:$0xf0]  ;;  %v1562_v35 = vld [vmem:[#allocation2 + $0x21c] sm:$0xf0]  ;;  %v1313_v39 = vor.u32 %v1771_v27, %v1310_v28  ;;  %v1768_v40 = vld [vmem:[#allocation2 + $0x4] sm:$0xf] }
  0x1e   :  { %569 = vmatpush.bf16.msra.mxu1 %v1417_v63  ;;  %596 = vmatpush.bf16.msra.mxu3 %v1337_v5  ;;  %v1488_v37 = vld [vmem:[#allocation2 + $0x180] sm:$0xf]  ;;  %v1817_v38 = vld [vmem:[#allocation2 + $0x188] sm:$0xf0]  ;;  %v2003_v41 = vor.u32 %v1766_v33, %v1284_v32  ;;  %v1765_v42 = vld [vmem:[%s2249_s0 + $0x4] sm:$0xf]  ;;  %v1565_v52 = vor.u32 %v1834_v31, %v1562_v35 }
  0x1f   :  { %v1286_v43 = vld [vmem:[%s2249_s0 + $0xc] sm:$0xf0]  ;;  %v1791_v46 = vld [vmem:[#allocation2 + $0xb8] sm:$0xf0]  ;;  %v1454_v53 = vld [vmem:[#allocation2 + $0x144] sm:$0xf0]  ;;  %v1489_v54 = vor.u32 %v1817_v38, %v1488_v37 }
  0x20   :  { %v1298_v44 = vld [vmem:[#allocation2 + $0xc] sm:$0xf0]  ;;  %v2011_v47 = vor.u32 %v1765_v42, %v1286_v43  ;;  %v1807_v49 = vld [vmem:[#allocation2 + $0x13c] sm:$0xf]  ;;  %v1292_v55 = vld [vmem:[%s2249_s0 + $0x8] sm:$0xf] }
  0x21   :  { %556 = vmatpush.bf16.msra.mxu0 %v1309_v10  ;;  %583 = vmatpush.bf16.msra.mxu2 %v1513_v16  ;;  %v1388_v45 = vld [vmem:[#allocation2 + $0xb0] sm:$0xf]  ;;  %v1815_v51 = vld [vmem:[#allocation2 + $0x178] sm:$0xf0]  ;;  %v1767_v56 = vld [vmem:[%s2249_s0 + $0x10] sm:$0xf0]  ;;  %v1301_v59 = vor.u32 %v1768_v40, %v1298_v44  ;;  %v1457_v0 = vor.u32 %v1807_v49, %v1454_v53 }
  0x22   :  { %570 = vmatpush.bf16.msra.mxu1 %v1405_v12  ;;  %597 = vmatpush.bf16.msra.mxu3 %v1325_v20  ;;  %v1484_v50 = vld [vmem:[#allocation2 + $0x170] sm:$0xf]  ;;  %v1831_v57 = vld [vmem:[#allocation2 + $0x1fc] sm:$0xf]  ;;  %v1550_v58 = vld [vmem:[#allocation2 + $0x204] sm:$0xf0]  ;;  %v1389_v60 = vor.u32 %v1791_v46, %v1388_v45  ;;  %v2021_v1 = vor.u32 %v1767_v56, %v1292_v55 }
  0x23   :  { %v1485_v61 = vor.u32 %v1815_v51, %v1484_v50  ;;  %v1376_v62 = vld [vmem:[#allocation2 + $0x98] sm:$0xf]  ;;  %v1788_v63 = vld [vmem:[#allocation2 + $0xa0] sm:$0xf0]  ;;  %v1553_v4 = vor.u32 %v1831_v57, %v1550_v58  ;;  %v1442_v6 = vld [vmem:[#allocation2 + $0x12c] sm:$0xf0] }
  0x24   :  { %v1472_v2 = vld [vmem:[#allocation2 + $0x158] sm:$0xf]  ;;  %v1812_v3 = vld [vmem:[#allocation2 + $0x160] sm:$0xf0]  ;;  %v1538_v8 = vld [vmem:[#allocation2 + $0x1ec] sm:$0xf0]  ;;  %v1377_v9 = vor.u32 %v1788_v63, %v1376_v62 }
  0x25   :  { %557 = vmatpush.bf16.msra.mxu0 %v1297_v24  ;;  %584 = vmatpush.bf16.msra.mxu2 %v1501_v36  ;;  %v1804_v5 = vld [vmem:[#allocation2 + $0x124] sm:$0xf]  ;;  %v1473_v10 = vor.u32 %v1812_v3, %v1472_v2  ;;  %v1364_v11 = vld [vmem:[#allocation2 + $0x80] sm:$0xf]  ;;  %v1785_v12 = vld [vmem:[#allocation2 + $0x88] sm:$0xf0] }
  0x26   :  { %571 = vmatpush.bf16.msra.mxu1 %v1393_v30  ;;  %598 = vmatpush.bf16.msra.mxu3 %v1313_v39  ;;  %v1828_v7 = vld [vmem:[#allocation2 + $0x1e4] sm:$0xf]  ;;  %v1445_v13 = vor.u32 %v1804_v5, %v1442_v6  ;;  %v1460_v14 = vld [vmem:[#allocation2 + $0x140] sm:$0xf]  ;;  %v1809_v15 = vld [vmem:[#allocation2 + $0x148] sm:$0xf0]  ;;  %v1365_v21 = vor.u32 %v1785_v12, %v1364_v11 }
  0x27   :  { %v1541_v16 = vor.u32 %v1828_v7, %v1538_v8  ;;  %v1801_v17 = vld [vmem:[#allocation2 + $0x10c] sm:$0xf]  ;;  %v1430_v18 = vld [vmem:[#allocation2 + $0x114] sm:$0xf0]  ;;  %v1461_v22 = vor.u32 %v1809_v15, %v1460_v14  ;;  %v1352_v23 = vld [vmem:[#allocation2 + $0x68] sm:$0xf] }
  0x28   :  { %558 = vmatmul.bf16.vlgmr.msra.gmra.mxu0 %v2003_v41  ;;  %v1825_v19 = vld [vmem:[#allocation2 + $0x1cc] sm:$0xf]  ;;  %v1526_v20 = vld [vmem:[#allocation2 + $0x1d4] sm:$0xf0]  ;;  %v1782_v24 = vld [vmem:[#allocation2 + $0x70] sm:$0xf0]  ;;  %v1433_v25 = vor.u32 %v1801_v17, %v1430_v18 }
  0x29   :  { %606 = vmatpush.bf16.msrb.mxu0 %v1481_v29  ;;  %572 = vmatmul.bf16.vlgmr.msra.gmra.mxu1 %v2011_v47  ;;  %v1448_v26 = vld [vmem:[#allocation2 + $0x128] sm:$0xf]  ;;  %v1806_v27 = vld [vmem:[#allocation2 + $0x130] sm:$0xf0]  ;;  %v1529_v28 = vor.u32 %v1825_v19, %v1526_v20  ;;  %v1418_v30 = vld [vmem:[#allocation2 + $0xfc] sm:$0xf0]  ;;  %v1353_v33 = vor.u32 %v1782_v24, %v1352_v23 }
  0x2a   :  { %620 = vmatpush.bf16.msrb.mxu1 %v1577_v34  ;;  %585 = vmatpush.bf16.msra.mxu2 %v1489_v54  ;;  %v1798_v29 = vld [vmem:[#allocation2 + $0xf4] sm:$0xf]  ;;  %v1514_v32 = vld [vmem:[#allocation2 + $0x1bc] sm:$0xf0]  ;;  %v1795_v34 = vld [vmem:[#allocation2 + $0xdc] sm:$0xf]  ;;  %v1449_v35 = vor.u32 %v1806_v27, %v1448_v26 }
  0x2b   :  { %599 = vmatpush.bf16.msra.mxu3 %v1301_v59  ;;  %v1822_v31 = vld [vmem:[#allocation2 + $0x1b4] sm:$0xf]  ;;  %v1340_v36 = vld [vmem:[#allocation2 + $0x50] sm:$0xf]  ;;  %v1779_v37 = vld [vmem:[#allocation2 + $0x58] sm:$0xf0]  ;;  %v1421_v38 = vor.u32 %v1798_v29, %v1418_v30 }
  0x2c   :  { %v1436_v39 = vld [vmem:[#allocation2 + $0x110] sm:$0xf]  ;;  %v1803_v40 = vld [vmem:[#allocation2 + $0x118] sm:$0xf0]  ;;  %v1517_v42 = vor.u32 %v1822_v31, %v1514_v32  ;;  %v1406_v43 = vld [vmem:[#allocation2 + $0xe4] sm:$0xf0]  ;;  %v1341_v46 = vor.u32 %v1779_v37, %v1340_v36 }
  0x2d   :  { %607 = vmatpush.bf16.msrb.mxu0 %v1469_v48  ;;  %586 = vmatmul.bf16.vlgmr.msra.gmra.mxu2 %v2021_v1  ;;  %v1819_v44 = vld [vmem:[#allocation2 + $0x19c] sm:$0xf]  ;;  %v1502_v45 = vld [vmem:[#allocation2 + $0x1a4] sm:$0xf0]  ;;  %v1437_v48 = vor.u32 %v1803_v40, %v1436_v39  ;;  %v1328_v49 = vld [vmem:[#allocation2 + $0x38] sm:$0xf]  ;;  %v1409_v51 = vor.u32 %v1795_v34, %v1406_v43 }
  0x2e   :  { %621 = vmatpush.bf16.msrb.mxu1 %v1565_v52  ;;  %634 = vmatpush.bf16.msrb.mxu2 %v1389_v60  ;;  %v1776_v50 = vld [vmem:[#allocation2 + $0x40] sm:$0xf0]  ;;  %v1424_v52 = vld [vmem:[#allocation2 + $0xf8] sm:$0xf]  ;;  %v1505_v54 = vor.u32 %v1819_v44, %v1502_v45  ;;  %v1394_v56 = vld [vmem:[#allocation2 + $0xcc] sm:$0xf0] }
  0x2f   :  { %648 = vmatpush.bf16.msrb.mxu3 %v1485_v61  ;;  %v1800_v53 = vld [vmem:[#allocation2 + $0x100] sm:$0xf0]  ;;  %v1580_v57 = vld [vmem:[#allocation2 + $0x230] sm:$0xf]  ;;  %v1839_v58 = vld [vmem:[#allocation2 + $0x238] sm:$0xf0]  ;;  %v1329_v61 = vor.u32 %v1776_v50, %v1328_v49 }
  0x30   :  { %600 = vmatmul.bf16.vlgmr.msra.gmra.mxu3 %v2003_v41  ;;  %v1792_v55 = vld [vmem:[#allocation2 + $0xc4] sm:$0xf]  ;;  %v1490_v60 = vld [vmem:[#allocation2 + $0x18c] sm:$0xf0]  ;;  %v1425_v62 = vor.u32 %v1800_v53, %v1424_v52  ;;  %v1316_v63 = vld [vmem:[#allocation2 + $0x20] sm:$0xf]  ;;  %v1581_v5 = vor.u32 %v1839_v58, %v1580_v57 }
  0x31   :  { %608 = vmatpush.bf16.msrb.mxu0 %v1457_v0  ;;  %v1816_v59 = vld [vmem:[#allocation2 + $0x184] sm:$0xf]  ;;  %v1773_v0 = vld [vmem:[#allocation2 + $0x28] sm:$0xf0]  ;;  %v1397_v2 = vor.u32 %v1792_v55, %v1394_v56  ;;  %v1412_v3 = vld [vmem:[#allocation2 + $0xe0] sm:$0xf] }
  0x32   :  { %622 = vmatpush.bf16.msrb.mxu1 %v1553_v4  ;;  %635 = vmatpush.bf16.msrb.mxu2 %v1377_v9  ;;  %v1797_v4 = vld [vmem:[#allocation2 + $0xe8] sm:$0xf0]  ;;  %v1493_v6 = vor.u32 %v1816_v59, %v1490_v60  ;;  %v1568_v7 = vld [vmem:[#allocation2 + $0x218] sm:$0xf]  ;;  %v1836_v8 = vld [vmem:[#allocation2 + $0x220] sm:$0xf0]  ;;  %v1317_v9 = vor.u32 %v1773_v0, %v1316_v63 }
  0x33   :  { %649 = vmatpush.bf16.msrb.mxu3 %v1473_v10  ;;  %v1413_v10 = vor.u32 %v1797_v4, %v1412_v3  ;;  %v1304_v11 = vld [vmem:[#allocation2 + $0x8] sm:$0xf]  ;;  %v1770_v12 = vld [vmem:[#allocation2 + $0x10] sm:$0xf0]  ;;  %v1569_v15 = vor.u32 %v1836_v8, %v1568_v7  ;;  %v1833_v17 = vld [vmem:[#allocation2 + $0x208] sm:$0xf0] }
  0x34   :  { %v1794_v14 = vld [vmem:[#allocation2 + $0xd0] sm:$0xf0]  ;;  %v1305_v18 = vor.u32 %v1770_v12, %v1304_v11  ;;  %v1532_v24 = vld [vmem:[#allocation2 + $0x1d0] sm:$0xf]  ;;  %v1520_v27 = vld [vmem:[#allocation2 + $0x1b8] sm:$0xf] }
  0x35   :  { %609 = vmatpush.bf16.msrb.mxu0 %v1445_v13  ;;  %v1400_v13 = vld [vmem:[#allocation2 + $0xc8] sm:$0xf]  ;;  %v1508_v30 = vld [vmem:[#allocation2 + $0x1a0] sm:$0xf]  ;;  %v1821_v31 = vld [vmem:[#allocation2 + $0x1a8] sm:$0xf0] }
  0x36   :  { %623 = vmatpush.bf16.msrb.mxu1 %v1541_v16  ;;  %636 = vmatpush.bf16.msrb.mxu2 %v1365_v21  ;;  %v1556_v16 = vld [vmem:[#allocation2 + $0x200] sm:$0xf]  ;;  %v1401_v19 = vor.u32 %v1794_v14, %v1400_v13  ;;  %v1544_v21 = vld [vmem:[#allocation2 + $0x1e8] sm:$0xf]  ;;  %v1509_v32 = vor.u32 %v1821_v31, %v1508_v30  ;;  %v1818_v34 = vld [vmem:[#allocation2 + $0x190] sm:$0xf0] }
  0x37   :  { %650 = vmatpush.bf16.msrb.mxu3 %v1461_v22  ;;  %v1557_v20 = vor.u32 %v1833_v17, %v1556_v16  ;;  %v1830_v22 = vld [vmem:[#allocation2 + $0x1f0] sm:$0xf0]  ;;  %v1853_v40 = vld [vmem:[%s2252_s3 + $0x64] sm:$0xf0]  ;;  %v1634_v45 = vld [vmem:[%s2252_s3 + $0x68] sm:$0xf0] }
  0x38   :  { %v1545_v23 = vor.u32 %v1830_v22, %v1544_v21  ;;  %v1854_v36 = vld [vmem:[%s2252_s3 + $0x74] sm:$0xf]  ;;  %v1851_v49 = vld [vmem:[%s2252_s3 + $0x54] sm:$0xf0]  ;;  %v1626_v52 = vld [vmem:[%s2252_s3 + $0x58] sm:$0xf0] }
  0x39   :  { %610 = vmatpush.bf16.msrb.mxu0 %v1433_v25  ;;  %v1827_v25 = vld [vmem:[#allocation2 + $0x1d8] sm:$0xf0]  ;;  %v1850_v50 = vld [vmem:[%s2252_s3 + $0x54] sm:$0xf]  ;;  %v1616_v55 = vld [vmem:[%s2252_s3 + $0x40] sm:$0xf] }
  0x3a   :  { %624 = vmatpush.bf16.msrb.mxu1 %v1529_v28  ;;  %637 = vmatpush.bf16.msrb.mxu2 %v1353_v33  ;;  %v1533_v26 = vor.u32 %v1827_v25, %v1532_v24  ;;  %v1824_v28 = vld [vmem:[#allocation2 + $0x1c0] sm:$0xf0]  ;;  %v1496_v33 = vld [vmem:[#allocation2 + $0x188] sm:$0xf]  ;;  %v1629_v53 = vor.u32 %v1850_v50, %v1626_v52  ;;  %v1618_v59 = vld [vmem:[%s2252_s3 + $0x48] sm:$0xf0] }
  0x3b   :  { %651 = vmatpush.bf16.msrb.mxu3 %v1449_v35  ;;  %v1521_v29 = vor.u32 %v1824_v28, %v1520_v27  ;;  %v1497_v35 = vor.u32 %v1818_v34, %v1496_v33  ;;  %v1849_v56 = vld [vmem:[%s2252_s3 + $0x44] sm:$0xf0]  ;;  %v1848_v57 = vld [vmem:[%s2252_s3 + $0x44] sm:$0xf]  ;;  %v1608_v0 = vld [vmem:[%s2252_s3 + $0x30] sm:$0xf] }
  0x3c   :  { %v1617_v58 = vor.u32 %v1849_v56, %v1616_v55  ;;  %v1621_v60 = vor.u32 %v1848_v57, %v1618_v59  ;;  %v1846_v3 = vld [vmem:[%s2252_s3 + $0x34] sm:$0xf]  ;;  %v1600_v7 = vld [vmem:[%s2252_s3 + $0x20] sm:$0xf]  ;;  %v1845_v8 = vld [vmem:[%s2252_s3 + $0x24] sm:$0xf0] }
  0x3d   :  { %611 = vmatpush.bf16.msrb.mxu0 %v1421_v38  ;;  %v1642_v38 = vld [vmem:[%s2252_s3 + $0x78] sm:$0xf0]  ;;  %v1602_v11 = vld [vmem:[%s2252_s3 + $0x28] sm:$0xf0]  ;;  %v1592_v14 = vld [vmem:[%s2252_s3 + $0x10] sm:$0xf] }
  0x3e   :  { %625 = vmatpush.bf16.msrb.mxu1 %v1517_v42  ;;  %638 = vmatpush.bf16.msrb.mxu2 %v1341_v46  ;;  %v1645_v39 = vor.u32 %v1854_v36, %v1642_v38  ;;  %v1852_v42 = vld [vmem:[%s2252_s3 + $0x64] sm:$0xf]  ;;  %v1842_v16 = vld [vmem:[%s2252_s3 + $0x14] sm:$0xf]  ;;  %v1841_v24 = vld [vmem:[%s2252_s3 + $0x4] sm:$0xf0] }
  0x3f   :  { %652 = vmatpush.bf16.msrb.mxu3 %v1437_v48  ;;  %v1637_v46 = vor.u32 %v1852_v42, %v1634_v45  ;;  %v1624_v48 = vld [vmem:[%s2252_s3 + $0x50] sm:$0xf]  ;;  %v1840_v25 = vld [vmem:[%s2252_s3 + $0x4] sm:$0xf]  ;;  %v1586_v28 = vld [vmem:[%s2252_s3 + $0x8] sm:$0xf0] }
  0x40   :  { %v1589_v30 = vor.u32 %v1840_v25, %v1586_v28  ;;  %vm899_vm2 = vcmask 523264   ;;  %vm971_vm3 = vcmask 1041409   ;;  %vm986_vm4 = vcmask 261120   ;;  %s1943_s16 = smov [#allocation5]   ;;  %s1272_s20 = sshll.u32 %s2258_s9, 4  ;;  %s1273_s20 = int_to_ptr.hbm [resolvable:$true] %s1272_s20 }
  0x41   :  { %612 = vmatpush.bf16.msrb.mxu0 %v1409_v51  ;;  %v1625_v51 = vor.u32 %v1851_v49, %v1624_v48  ;;  %s1270_s17 = sshll.u32 %s1943_s16, 4  ;;  %s1271_s17 = int_to_ptr.vmem [resolvable:$true] %s1270_s17 }
  0x42   :  { %626 = vmatpush.bf16.msrb.mxu1 %v1505_v54  ;;  %639 = vmatpush.bf16.msrb.mxu2 %v1329_v61 }
  0x43   :  { %653 = vmatpush.bf16.msrb.mxu3 %v1425_v62 }
  0x45   :  { %613 = vmatpush.bf16.msrb.mxu0 %v1397_v2  ;;  %v1847_v2 = vld [vmem:[%s2252_s3 + $0x34] sm:$0xf0] }
  0x46   :  { %627 = vmatpush.bf16.msrb.mxu1 %v1493_v6  ;;  %640 = vmatpush.bf16.msrb.mxu2 %v1317_v9  ;;  %v1609_v4 = vor.u32 %v1847_v2, %v1608_v0  ;;  %v1844_v9 = vld [vmem:[%s2252_s3 + $0x24] sm:$0xf] }
  0x47   :  { %654 = vmatpush.bf16.msrb.mxu3 %v1413_v10  ;;  %v1601_v10 = vor.u32 %v1845_v8, %v1600_v7  ;;  %v1605_v13 = vor.u32 %v1844_v9, %v1602_v11 }
  0x48   :  { %614 = vmatmul.bf16.vlgmr.msrb.gmra.mxu0 %v2011_v47 }
  0x49   :  { %662 = vmatpush.bf16.msra.mxu0 %v1581_v5  ;;  %628 = vmatmul.bf16.vlgmr.msrb.gmra.mxu1 %v2021_v1  ;;  %v1610_v5 = vld [vmem:[%s2252_s3 + $0x38] sm:$0xf0] }
  0x4a   :  { %641 = vmatpush.bf16.msrb.mxu2 %v1305_v18  ;;  %v1613_v6 = vor.u32 %v1846_v3, %v1610_v5 }
  0x4b   :  { %655 = vmatpush.bf16.msrb.mxu3 %v1401_v19  ;;  %v1594_v19 = vld [vmem:[%s2252_s3 + $0x18] sm:$0xf0] }
  0x4c   :  { %v1597_v22 = vor.u32 %v1842_v16, %v1594_v19 }
  0x4d   :  { %663 = vmatpush.bf16.msra.mxu0 %v1569_v15  ;;  %642 = vmatmul.bf16.vlgmr.msrb.gmra.mxu2 %v2003_v41  ;;  %v1640_v41 = vld [vmem:[%s2252_s3 + $0x70] sm:$0xf]  ;;  %v1843_v15 = vld [vmem:[%s2252_s3 + $0x14] sm:$0xf0] }
  0x4e   :  { %656 = vmatmul.bf16.vlgmr.msrb.gmra.mxu3 %v2011_v47  ;;  %v1855_v47 = vld [vmem:[%s2252_s3 + $0x74] sm:$0xf0]  ;;  %818 = vmatpush.bf16.msra.mxu2 %v1645_v39  ;;  %v1593_v18 = vor.u32 %v1843_v15, %v1592_v14  ;;  %v1857_v14 = vld [vmem:[%s2254_s5 + $0x8] sm:$0xff]  ;;  %v1856_v15 = vld [vmem:[%s2254_s5] sm:$0xff] }
  0x4f   :  { %v1641_v37 = vor.u32 %v1855_v47, %v1640_v41 }
  0x51   :  { %664 = vmatpush.bf16.msra.mxu0 %v1557_v20  ;;  %804 = vmatpush.bf16.msra.mxu1 %v1641_v37 }
  0x52   :  { %819 = vmatpush.bf16.msra.mxu2 %v1637_v46 }
  0x55   :  { %665 = vmatpush.bf16.msra.mxu0 %v1545_v23  ;;  %v1584_v23 = vld [vmem:[%s2252_s3] sm:$0xf] }
  0x56   :  { %820 = vmatpush.bf16.msra.mxu2 %v1629_v53  ;;  %v1585_v27 = vor.u32 %v1841_v24, %v1584_v23  ;;  %v1882_v53 = vld [vmem:[%s2251_s2] ss:$0 sm:$0xff]  ;;  %s1941_s2 = smov 64  }
  0x57   :  { %v1883_v24 = vld [vmem:[%s2253_s4] ss:$0 sm:$0xff]  ;;  %s1942_s4 = smov 96  }
  0x59   :  { %666 = vmatpush.bf16.msra.mxu0 %v1533_v26 }
  0x5a   :  { %821 = vmatpush.bf16.msra.mxu2 %v1621_v60 }
  0x5d   :  { %667 = vmatpush.bf16.msra.mxu0 %v1521_v29  ;;  %v676_v29 = vlaneseq }
  0x5e   :  { %822 = vmatpush.bf16.msra.mxu2 %v1613_v6 }
  0x5f   :  { %v2126_v33 = vshrl.u32 %v676_v29, 7 }
  0x61   :  { %668 = vmatpush.bf16.msra.mxu0 %v1509_v32  ;;  %vm678_vm0 = vcmp.eq.s32.totalorder %v2126_v33, 0  ;;  %vm683_vm1 = vcmp.eq.s32.totalorder %v2126_v33, 7 }
  0x62   :  { %823 = vmatpush.bf16.msra.mxu2 %v1605_v13  ;;  %v1858_v13 = vld [vmem:[%s2254_s5 + $0x10] sm:$0xff] }
  0x65   :  { %669 = vmatpush.bf16.msra.mxu0 %v1497_v35 }
  0x66   :  { %824 = vmatpush.bf16.msra.mxu2 %v1597_v22 }
  0x68   :  { %670 = vmatmul.bf16.vlgmr.msra.gmra.mxu0 %v2021_v1  ;;  %v1632_v1 = vld [vmem:[%s2252_s3 + $0x60] sm:$0xf] }
  0x69   :  { %v1633_v44 = vor.u32 %v1853_v40, %v1632_v1 }
  0x6a   :  { %825 = vmatpush.bf16.msra.mxu2 %v1589_v30 }
  0x6b   :  { %805 = vmatpush.bf16.msra.mxu1 %v1633_v44 }
  0x6f   :  { %806 = vmatpush.bf16.msra.mxu1 %v1625_v51 }
  0x73   :  { %807 = vmatpush.bf16.msra.mxu1 %v1617_v58 }
  0x77   :  { %808 = vmatpush.bf16.msra.mxu1 %v1609_v4 }
  0x7b   :  { %809 = vmatpush.bf16.msra.mxu1 %v1601_v10 }
  0x7f   :  { %810 = vmatpush.bf16.msra.mxu1 %v1593_v18 }
  0x83   :  { %811 = vmatpush.bf16.msra.mxu1 %v1585_v27 }
  0xa5   :  { %v559_v43 = vpop.f32.mrf.mxu0 }
  0xa6   :  { %v573_v61 = vpop.f32.mrf.mxu1 }
  0xa7   :  { %v574_v26 = vadd.f32 %v573_v61, %v559_v43 }
  0xad   :  { %v561_v54 = vpop.f32.mrf.mxu0 }
  0xae   :  { %v575_v17 = vpop.f32.mrf.mxu1 }
  0xaf   :  { %v576_v38 = vadd.f32 %v575_v17, %v561_v54 }
  0xb0   :  { %v587_v62 = vpop.f32.mrf.mxu2 }
  0xb1   :  { %v588_v32 = vadd.f32 %v587_v62, %v574_v26 }
  0xb3   :  { %v601_v63 = vpop.f32.mrf.mxu3  ;;  %v679_v36 = vrot.slane %v588_v32, 7 }
  0xb5   :  { %v681_v40 = vsel %vm678_vm0, 0.0, %v679_v36 }
  0xb8   :  { %v589_v20 = vpop.f32.mrf.mxu2 }
  0xb9   :  { %v590_v43 = vadd.f32 %v589_v20, %v576_v38 }
  0xbb   :  { %v603_v21 = vpop.f32.mrf.mxu3  ;;  %v680_v54 = vrot.slane %v590_v43, 7  ;;  %v1863_v43 = vld [vmem:[%s2256_s7 + $0x18] sm:$0xff] }
  0xbd   :  { %v682_v60 = vsel %vm678_vm0, 0.0, %v680_v54  ;;  %v1861_v54 = vld [vmem:[%s2256_s7 + $0x8] sm:$0xff] }
  0xc5   :  { %v615_v12 = vpop.f32.mrf.mxu0 }
  0xc6   :  { %v629_v41 = vpop.f32.mrf.mxu1  ;;  %v616_v47 = vadd.f32 %v615_v12, %v601_v63  ;;  %v1859_v12 = vld [vmem:[%s2254_s5 + $0x18] sm:$0xff] }
  0xc7   :  { %907 = vmatpush.bf16.msra.mxu3 %v1859_v12 }
  0xc8   :  { %v630_v39 = vadd.f32 %v629_v41, %v616_v47 }
  0xca   :  { %v688_v45 = vadd.f32 %v681_v40, %v630_v39 }
  0xcb   :  { %908 = vmatpush.bf16.msra.mxu3 %v1858_v13 }
  0xcd   :  { %v617_v31 = vpop.f32.mrf.mxu0 }
  0xce   :  { %v618_v46 = vadd.f32 %v617_v31, %v603_v21  ;;  %v631_v50 = vpop.f32.mrf.mxu1 }
  0xcf   :  { %909 = vmatpush.bf16.msra.mxu3 %v1857_v14 }
  0xd0   :  { %v643_v34 = vpop.f32.mrf.mxu2  ;;  %v632_v56 = vadd.f32 %v631_v50, %v618_v46  ;;  %v1871_v46 = vld [vmem:[%s2256_s7 + $0x58] sm:$0xff]  ;;  %v1866_v50 = vld [vmem:[%s2256_s7 + $0x30] sm:$0xff] }
  0xd1   :  { %v657_v35 = vpop.f32.mrf.mxu3  ;;  %1080 = vmatpush.bf16.msrb.mxu1 %v1871_v46 }
  0xd2   :  { %v658_v37 = vadd.f32 %v657_v35, %v643_v34  ;;  %v689_v62 = vadd.f32 %v682_v60, %v632_v56  ;;  %v1865_v56 = vld [vmem:[%s2256_s7 + $0x28] sm:$0xff]  ;;  %v1872_v60 = vld [vmem:[%s2256_s7 + $0x60] sm:$0xff] }
  0xd3   :  { %910 = vmatpush.bf16.msra.mxu3 %v1856_v15 }
  0xd7   :  { %996 = vmatpush.bf16.msrb.mxu3 %v1863_v43 }
  0xd8   :  { %v645_v48 = vpop.f32.mrf.mxu2 }
  0xd9   :  { %v659_v49 = vpop.f32.mrf.mxu3 }
  0xda   :  { %v660_v55 = vadd.f32 %v659_v49, %v645_v48  ;;  %v1862_v48 = vld [vmem:[%s2256_s7 + $0x10] sm:$0xff] }
  0xdb   :  { %v1874_v49 = vld [vmem:[%s2256_s7 + $0x70] sm:$0xff]  ;;  %997 = vmatpush.bf16.msrb.mxu3 %v1862_v48 }
  0xe5   :  { %v671_v1 = vpop.f32.mrf.mxu0 }
  0xe6   :  { %v672_v42 = vadd.f32 %v671_v1, %v658_v37 }
  0xe8   :  { %v684_v44 = vrot.slane %v672_v42, 1 }
  0xea   :  { %v686_v51 = vsel %vm683_vm1, 0.0, %v684_v44  ;;  %v1875_v44 = vld [vmem:[%s2256_s7 + $0x78] sm:$0xff] }
  0xeb   :  { %v690_v52 = vadd.f32 %v688_v45, %v686_v51  ;;  %v1867_v45 = vld [vmem:[%s2256_s7 + $0x38] sm:$0xff]  ;;  %1122 = vmatpush.bf16.msrb.mxu2 %v1875_v44  ;;  %v1870_v51 = vld [vmem:[%s2256_s7 + $0x50] sm:$0xff] }
  0xec   :  { %1038 = vmatpush.bf16.msrb.mxu0 %v1867_v45  ;;  %1081 = vmatpush.bf16.msrb.mxu1 %v1870_v51 }
  0xed   :  { %v673_v57 = vpop.f32.mrf.mxu0  ;;  %v696_v59 = vadd.f32 %v1882_v53, %v690_v52 }
  0xee   :  { %v674_v58 = vadd.f32 %v673_v57, %v660_v55  ;;  %v1873_v55 = vld [vmem:[%s2256_s7 + $0x68] sm:$0xff] }
  0xef   :  { %v698_v0 = vmax.f32 %v696_v59, 0.0  ;;  %1123 = vmatpush.bf16.msrb.mxu2 %v1874_v49  ;;  %v1869_v57 = vld [vmem:[%s2256_s7 + $0x48] sm:$0xff]  ;;  %v1860_v59 = vld [vmem:[%s2256_s7] sm:$0xff] }
  0xf0   :  { %v685_v61 = vrot.slane %v674_v58, 1  ;;  %1039 = vmatpush.bf16.msrb.mxu0 %v1866_v50 }
  0xf1   :  { %v700_v4 = vpack.c.bf16 %v698_v0, %v698_v0  ;;  %v1868_v0 = vld [vmem:[%s2256_s7 + $0x40] sm:$0xff] }
  0xf2   :  { %v687_v63 = vsel %vm683_vm1, 0.0, %v685_v61 }
  0xf3   :  { %v691_v2 = vadd.f32 %v689_v62, %v687_v63  ;;  %v720_v7 = vunpack.c.l.b16 %v700_v4  ;;  %v1864_v63 = vld [vmem:[%s2256_s7 + $0x20] sm:$0xff] }
  0xf4   :  { %1185 = vmatpush.bf16.msra.mxu0 %v1865_v56 }
  0xf5   :  { %v697_v3 = vadd.f32 %v1882_v53, %v691_v2 }
  0xf7   :  { %v699_v5 = vmax.f32 %v697_v3, 0.0  ;;  %v1884_v3 = vld [vmem:[%s2255_s6] ss:$0 sm:$0xff] }
  0xf8   :  { %1186 = vmatpush.bf16.msra.mxu0 %v1864_v63 }
  0xf9   :  { %v701_v6 = vpack.c.bf16 %v699_v5, %v699_v5 }
  0xfb   :  { %v721_v8 = vunpack.c.l.b16 %v701_v6 }
  0xfd   :  { %v722_v9 = vpack.c.b16 %v721_v8, %v720_v7 }
  0xff   :  { %812 = vmatmul.bf16.vlgmr.msra.gmra.mxu1 %v722_v9  ;;  %826 = vmatmul.bf16.vlgmr.msra.gmra.mxu2 %v722_v9 }
 0x100   :  { %1249 = vmatpush.bf16.msra.mxu2 %v1873_v55  ;;  %1217 = vmatpush.bf16.msra.mxu1 %v1869_v57 }
 0x104   :  { %1250 = vmatpush.bf16.msra.mxu2 %v1872_v60  ;;  %1218 = vmatpush.bf16.msra.mxu1 %v1868_v0 }
 0x17c   :  { %v813_v10 = vpop.f32.mrf.mxu1 }
 0x17d   :  { %842 = vrot.lane.b32.xlu0 %v813_v10, %s1941_s2  ;;  %v832_v17 = vrot.slane %v813_v10, 7 }
 0x17f   :  { %v834_v20 = vsel %vm678_vm0, 0.0, %v832_v17 }
 0x182   :  { %v827_v16 = vpop.f32.mrf.mxu2 }
 0x183   :  { %v836_v18 = vrot.slane %v827_v16, 1 }
 0x184   :  { %v815_v11 = vpop.f32.mrf.mxu1 }
 0x185   :  { %844 = vrot.lane.b32.xlu0 %v815_v11, %s1941_s2  ;;  %v838_v22 = vsel %vm683_vm1, 0.0, %v836_v18  ;;  %v833_v26 = vrot.slane %v815_v11, 7 }
 0x187   :  { %v835_v30 = vsel %vm678_vm0, 0.0, %v833_v26 }
 0x18a   :  { %v829_v23 = vpop.f32.mrf.mxu2 }
 0x18b   :  { %v837_v27 = vrot.slane %v829_v23, 1 }
 0x18d   :  { %v839_v32 = vsel %vm683_vm1, 0.0, %v837_v27 }
 0x1ef   :  { %v843_v19 = vpop.permute.xlu0 %842 }
 0x1f0   :  { %v848_v21 = vadd.f32 %v843_v19, %v834_v20 }
 0x1f2   :  { %v850_v25 = vadd.f32 %v848_v21, %v838_v22 }
 0x1f4   :  { %v856_v28 = vadd.f32 %v1883_v24, %v850_v25 }
 0x1f6   :  { %v858_v34 = vmax.f32 %v856_v28, 0.0 }
 0x1f7   :  { %v845_v29 = vpop.permute.xlu0 %844 }
 0x1f8   :  { %v849_v31 = vadd.f32 %v845_v29, %v835_v30  ;;  %v860_v47 = vpack.c.bf16 %v858_v34, %v858_v34 }
 0x1fa   :  { %v851_v35 = vadd.f32 %v849_v31, %v839_v32  ;;  %v872_v38 = vunpack.c.l.b16 %v860_v47 }
 0x1fc   :  { %v857_v41 = vadd.f32 %v1883_v24, %v851_v35 }
 0x1fe   :  { %v859_v36 = vmax.f32 %v857_v41, 0.0 }
 0x200   :  { %v861_v37 = vpack.c.bf16 %v859_v36, %v859_v36 }
 0x202   :  { %v873_v39 = vunpack.c.l.b16 %v861_v37 }
 0x204   :  { %v874_v1 = vpack.c.b16 %v873_v39, %v872_v38 }
 0x206   :  { %1662 = vmatmul.msk.bf16.vlgmr.msra.gmra.mxu3 %vm899_vm2, %v874_v1 }
 0x207   :  { %1153 = vmatpush.bf16.msra.mxu3 %v1861_v54 }
 0x20b   :  { %1154 = vmatpush.bf16.msra.mxu3 %v1860_v59 }
 0x289   :  { %v912_v40 = vpop.f32.mrf.mxu3 }
 0x28a   :  { %933 = vrot.lane.b32.xlu2 %v912_v40, %s1942_s4  ;;  %923 = vrot.lane.b32.xlu1 %v912_v40, %s1941_s2  ;;  %v917_v53 = vrot.slane %v912_v40, 7 }
 0x28c   :  { %v919_v61 = vsel %vm678_vm0, 0.0, %v917_v53 }
 0x291   :  { %v914_v42 = vpop.f32.mrf.mxu3 }
 0x292   :  { %935 = vrot.lane.b32.xlu2 %v914_v42, %s1942_s4  ;;  %925 = vrot.lane.b32.xlu1 %v914_v42, %s1941_s2  ;;  %v918_v6 = vrot.slane %v914_v42, 7 }
 0x294   :  { %v920_v11 = vsel %vm678_vm0, 0.0, %v918_v6 }
 0x2e4   :  { %v934_v52 = vpop.permute.xlu2 %933 }
 0x2e5   :  { %v939_v2 = vadd.f32 %v934_v52, %v919_v61 }
 0x2ec   :  { %v936_v8 = vpop.permute.xlu2 %935 }
 0x2ed   :  { %v940_v13 = vadd.f32 %v936_v8, %v920_v11 }
 0x2fc   :  { %v924_v58 = vpop.permute.xlu1 %923 }
 0x2fd   :  { %v929_v62 = vrot.slane %v924_v58, 1 }
 0x2ff   :  { %v931_v4 = vsel %vm683_vm1, 0.0, %v929_v62 }
 0x300   :  { %v941_v5 = vadd.f32 %v939_v2, %v931_v4 }
 0x302   :  { %v947_v7 = vadd.f32 %v1884_v3, %v941_v5 }
 0x304   :  { %v949_v9 = vmax.f32 %v947_v7, 0.0  ;;  %v926_v10 = vpop.permute.xlu1 %925 }
 0x305   :  { %v930_v12 = vrot.slane %v926_v10, 1  ;;  %v1885_v10 = vld [vmem:[%s2257_s8] ss:$0 sm:$0xff] }
 0x306   :  { %v951_v14 = vpack.c.bf16 %v949_v9, %v949_v9 }
 0x307   :  { %v932_v15 = vsel %vm683_vm1, 0.0, %v930_v12 }
 0x308   :  { %v942_v16 = vadd.f32 %v940_v13, %v932_v15  ;;  %v964_v17 = vunpack.c.l.b16 %v951_v14 }
 0x30a   :  { %v948_v18 = vadd.f32 %v1884_v3, %v942_v16  ;;  %v1667_v20 = vunpack.i.l.s16 %v964_v17 }
 0x30c   :  { %v950_v19 = vmax.f32 %v948_v18, 0.0  ;;  %v970_v24 = vrot.slane %v1667_v20, 1  ;;  %v1013_v25 = vrot.slane %v1667_v20, 3  ;;  %v1055_v26 = vrot.slane %v1667_v20, 5 }
 0x30d   :  { %v1097_v27 = vrot.slane %v1667_v20, 7  ;;  %v1160_v42 = vrot.slane %v1667_v20, 2  ;;  %v1192_v43 = vrot.slane %v1667_v20, 4  ;;  %v1224_v44 = vrot.slane %v1667_v20, 6 }
 0x30e   :  { %v952_v21 = vpack.c.bf16 %v950_v19, %v950_v19 }
 0x310   :  { %v965_v22 = vunpack.c.l.b16 %v952_v21 }
 0x312   :  { %v1668_v23 = vunpack.i.l.s16 %v965_v22 }
 0x314   :  { %v972_v28 = vsel %vm971_vm3, %v1668_v23, %v970_v24  ;;  %v1014_v29 = vrot.slane %v1668_v23, 2  ;;  %v1056_v30 = vrot.slane %v1668_v23, 4  ;;  %v1098_v33 = vrot.slane %v1668_v23, 6 }
 0x315   :  { %v973_v31 = vpack.c.b16 %v972_v28, %v972_v28  ;;  %v1129_v37 = vrot.slane %v1668_v23, 7  ;;  %v1161_v38 = vrot.slane %v1668_v23, 1  ;;  %v1193_v39 = vrot.slane %v1668_v23, 3 }
 0x316   :  { %v1015_v32 = vsel %vm971_vm3, %v1014_v29, %v1013_v25  ;;  %v1057_v34 = vsel %vm971_vm3, %v1056_v30, %v1055_v26  ;;  %v1099_v35 = vsel %vm971_vm3, %v1098_v33, %v1097_v27  ;;  %v1225_v1 = vrot.slane %v1668_v23, 5 }
 0x317   :  { %1677 = vmatmul.msk.bf16.vlgmr.msrb.gmra.mxu3 %vm986_vm4, %v973_v31  ;;  %v1016_v41 = vpack.c.b16 %v1015_v32, %v1015_v32  ;;  %v1058_v47 = vpack.c.b16 %v1057_v34, %v1057_v34  ;;  %v1100_v36 = vpack.c.b16 %v1099_v35, %v1099_v35  ;;  %v1130_v40 = vsel %vm971_vm3, %v1129_v37, %v1667_v20 }
 0x318   :  { %v1162_v45 = vsel %vm971_vm3, %v1161_v38, %v1160_v42  ;;  %v1194_v46 = vsel %vm971_vm3, %v1193_v39, %v1192_v43  ;;  %v1131_v48 = vpack.c.b16 %v1130_v40, %v1130_v40  ;;  %v1226_v49 = vsel %vm971_vm3, %v1225_v1, %v1224_v44 }
 0x319   :  { %1694 = vmatmul.msk.bf16.vlgmr.msrb.gmra.mxu0 %vm986_vm4, %v1016_v41  ;;  %1711 = vmatmul.msk.bf16.vlgmr.msrb.gmra.mxu1 %vm986_vm4, %v1058_v47  ;;  %v1163_v50 = vpack.c.b16 %v1162_v45, %v1162_v45  ;;  %v1195_v51 = vpack.c.b16 %v1194_v46, %v1194_v46  ;;  %v1227_v52 = vpack.c.b16 %v1226_v49, %v1226_v49 }
 0x31a   :  { %1728 = vmatmul.msk.bf16.vlgmr.msrb.gmra.mxu2 %vm986_vm4, %v1100_v36 }
 0x327   :  { %1737 = vmatmul.msk.bf16.vlgmr.msra.gmra.mxu3 %vm986_vm4, %v1131_v48 }
 0x329   :  { %1746 = vmatmul.msk.bf16.vlgmr.msra.gmra.mxu0 %vm986_vm4, %v1163_v50  ;;  %1755 = vmatmul.msk.bf16.vlgmr.msra.gmra.mxu1 %vm986_vm4, %v1195_v51 }
 0x32a   :  { %1764 = vmatmul.msk.bf16.vlgmr.msra.gmra.mxu2 %vm986_vm4, %v1227_v52 }
 0x396   :  { %v1041_v53 = vpop.f32.mrf.mxu0  ;;  %v1083_v54 = vpop.f32.mrf.mxu1 }
 0x39a   :  { %v999_v55 = vpop.f32.mrf.mxu3 }
 0x39d   :  { %v1125_v56 = vpop.f32.mrf.mxu2 }
 0x39e   :  { %v1043_v57 = vpop.f32.mrf.mxu0  ;;  %v1085_v58 = vpop.f32.mrf.mxu1 }
 0x3a2   :  { %v1001_v59 = vpop.f32.mrf.mxu3 }
 0x3a5   :  { %v1127_v60 = vpop.f32.mrf.mxu2 }
 0x3a6   :  { %v1188_v61 = vpop.f32.mrf.mxu0  ;;  %v1220_v62 = vpop.f32.mrf.mxu1 }
 0x3a7   :  { %v1189_v3 = vadd.f32 %v1188_v61, %v1041_v53  ;;  %v1221_v4 = vadd.f32 %v1220_v62, %v1083_v54 }
 0x3aa   :  { %v1156_v63 = vpop.f32.mrf.mxu3 }
 0x3ab   :  { %v1157_v0 = vadd.f32 %v1156_v63, %v999_v55 }
 0x3ad   :  { %v1252_v2 = vpop.f32.mrf.mxu2  ;;  %v1256_v8 = vadd.f32 %v1189_v3, %v1157_v0 }
 0x3ae   :  { %v1253_v5 = vadd.f32 %v1252_v2, %v1125_v56  ;;  %v1190_v6 = vpop.f32.mrf.mxu0  ;;  %v1222_v7 = vpop.f32.mrf.mxu1 }
 0x3b0   :  { %v1257_v9 = vadd.f32 %v1253_v5, %v1221_v4 }
 0x3b2   :  { %v1258_v11 = vadd.f32 %v1257_v9, %v1256_v8  ;;  %v1158_v12 = vpop.f32.mrf.mxu3 }
 0x3b4   :  { %v1263_v13 = vadd.f32 %v1885_v10, %v1258_v11 }
 0x3b5   :  { %v1254_v14 = vpop.f32.mrf.mxu2 }
 0x3b6   :  { %1264 = vst [vmem:[#allocation5] sm:$0x3] %v1263_v13 }
 0x3b7   :  { %1275 = dma.vmem_to_hbm [thread:$0]  %s1271_s17, 32, %s1273_s20, [#allocation4]  }
 0x3b8   :  { %1936 = dma.done.wait [#allocation4], 32  }
 0x3b9   :  { %1937 = vsyncadd [#allocation4], 4294967264 }
 0x3ba   :  { %1280 = vsyncpa [#allocation3], 1 }
 0x3bb   :  { %1281 = vsyncpa [#allocation4], 1 }

</bundles_post_ra>
